<compile_context>
chip_gen: v5e
topology: v5e:2x2
jax: 0.10.0
libtpu: 0.0.40
codegen_flags: <defaults>
</compile_context>

<pallas_src>
from functools import partial

import jax
import jax.numpy as jnp
from jax.experimental import pallas as pl
from jax.experimental.pallas import tpu as pltpu

LANE = 128          # vreg lane width; the hidden dim is zero-padded up to this.
MAX_TILE_B = 2048   # batch-tile cap (rows); a few MiB of VMEM at most.


def _round_up(n, m):
    return ((n + m - 1) // m) * m


def _default_act_dtype():
    """bf16 bias-add/tanh on chips with bf16 VPU/EUP (v6e, v7x); f32 elsewhere."""
    try:
        kind = jax.devices()[0].device_kind.lower()
    except Exception:
        return jnp.float32
    if ("v6" in kind) or ("v7" in kind) or ("7x" in kind):
        return jnp.bfloat16
    return jnp.float32


def discriminator_kernel(x_ref, w1_ref, b1_ref, w2_ref, b2_ref, w3_ref, b3_ref,
                         out_ref, *, act_dtype):
    """Fused 3-layer MLP forward on one (tile_b, num_inputs) batch tile.

    bf16 matmul inputs with f32 MXU accumulation; bias + tanh in `act_dtype`
    (bf16 on v6e/v7x, f32 on v5e); layer 3 is a VPU multiply + lane reduce so
    only a (tile_b, 1) column is written back to HBM."""
    x = x_ref[...]
    if x.dtype != jnp.bfloat16:
        x = x.astype(jnp.bfloat16)

    # linear1 + tanh
    h = jnp.dot(x, w1_ref[...], preferred_element_type=jnp.float32)
    h = jnp.tanh((h + b1_ref[...]).astype(act_dtype)).astype(jnp.bfloat16)

    # linear2 + tanh
    h = jnp.dot(h, w2_ref[...], preferred_element_type=jnp.float32)
    h = jnp.tanh((h + b2_ref[...]).astype(act_dtype)).astype(jnp.float32)

    # linear3 (scalar output): multiply by the w3 row and reduce over lanes.
    out = jnp.sum(h * w3_ref[...], axis=-1, keepdims=True) + b3_ref[...]
    out_ref[...] = out.astype(out_ref.dtype)


def _pick_tile_b(batch, cap=MAX_TILE_B):
    """Batch-tile size: a multiple of 8 (or == batch when batch < 8), capped at
    `cap`, chosen so large batches get >= 2 (preferably an even number of) grid
    steps — keeps both v7x TensorCores busy while amortizing per-step overhead."""
    if batch < 8:
        return batch                      # block dim == full array dim is legal
    n = max(pl.cdiv(batch, cap), 1)
    if batch > 16 and n < 2:
        n = 2                             # at least two grid steps
    if n > 2 and n % 2:
        n += 1                            # prefer an even step count (2 TCs)
    return min(_round_up(pl.cdiv(batch, n), 8), cap)


def discriminator_forward(x, kernel_params, act_dtype=None):
    """x: (batch, num_inputs) f32 or bf16; kernel_params from pack_kernel_params.
    Returns (batch, 1) f32."""
    w1, b1, w2, b2, w3, b3 = kernel_params
    batch, num_inputs = x.shape
    hp = w2.shape[0]
    if act_dtype is None:
        act_dtype = _default_act_dtype()

    tile_b = _pick_tile_b(batch)
    # Ragged batches: no jnp.pad (it would cost a full extra HBM read+write of
    # x).  The overhanging last block reads undefined rows, but rows are
    # independent and the overhang is never written to the output.
    n_tiles = pl.cdiv(batch, tile_b)

    # Rough VMEM budget (bytes) with generous headroom, clamped to 32 MiB so it
    # fits v7x's scoped default (half of its 64 MiB VMEM).
    x_bytes = tile_b * num_inputs * x.dtype.itemsize
    out_bytes = tile_b * 4
    w_bytes = sum(int(a.size) * a.dtype.itemsize for a in kernel_params)
    inter_bytes = tile_b * hp * 4          # one f32 hidden tile
    vmem_budget = (2 * (x_bytes + out_bytes)   # double-buffered activation streams
                   + 2 * w_bytes               # resident weights (default 2 bufs)
                   + 6 * inter_bytes           # h1/h2 values + compiler spill room
                   + (2 << 20))                # fixed headroom
    vmem_limit = int(min(max(vmem_budget, 4 << 20), 32 << 20))

    # Constant index_map -> block 0 for every grid step: weights/biases are
    # DMA'd once and stay resident in VMEM across all batch tiles.  (They total
    # ~100 KiB here, so the default double-buffering is negligible; single
    # buffering them only matters for much larger hidden sizes.)
    resident = lambda a: pl.BlockSpec(a.shape, lambda i: (0,) * a.ndim)

    kernel = partial(discriminator_kernel, act_dtype=act_dtype)

    out = pl.pallas_call(
        kernel,
        out_shape=jax.ShapeDtypeStruct((batch, 1), jnp.float32),
        grid_spec=pltpu.PrefetchScalarGridSpec(
            num_scalar_prefetch=0,
            grid=(n_tiles,),
            in_specs=[
                pl.BlockSpec((tile_b, num_inputs), lambda i: (i, 0)),  # x tile
                resident(w1), resident(b1),
                resident(w2), resident(b2),
                resident(w3), resident(b3),
            ],
            out_specs=pl.BlockSpec((tile_b, 1), lambda i: (i, 0)),
        ),
        compiler_params=pltpu.CompilerParams(
            dimension_semantics=("parallel",),
            vmem_limit_bytes=vmem_limit,
        ),
    )(x, w1, b1, w2, b2, w3, b3)
    return out


def init_params(key, num_inputs, hidden_size, num_outputs=1):
    """torch.nn.Linear-style U(-1/sqrt(fan_in), +...) init, weights stored as
    (in_features, out_features).  Mirrors Discriminator.__init__:
    linear3.weight *= 0.1 and linear3.bias *= 0.0."""
    ks = jax.random.split(key, 6)

    def linear(kw, kb, fan_in, fan_out):
        bound = 1.0 / jnp.sqrt(jnp.float32(fan_in))
        w = jax.random.uniform(kw, (fan_in, fan_out), jnp.float32, -bound, bound)
        b = jax.random.uniform(kb, (1, fan_out), jnp.float32, -bound, bound)
        return w, b

    w1, b1 = linear(ks[0], ks[1], num_inputs, hidden_size)
    w2, b2 = linear(ks[2], ks[3], hidden_size, hidden_size)
    w3, b3 = linear(ks[4], ks[5], hidden_size, num_outputs)
    w3 = w3 * 0.1
    b3 = b3 * 0.0
    return (w1, b1, w2, b2, w3, b3)


def pack_kernel_params(params):
    """Zero-pad the hidden dim to 128 lanes; matmul weights -> bf16, biases and
    the layer-3 row -> f32.  Padding rows/cols/bias lanes are zero so padded
    lanes never leak (tanh(0)=0)."""
    w1, b1, w2, b2, w3, b3 = params
    hidden = w1.shape[1]
    hp = _round_up(hidden, LANE)

    def pad2(a, rows, cols):
        return jnp.pad(a, ((0, rows - a.shape[0]), (0, cols - a.shape[1])))

    w1p = pad2(w1, w1.shape[0], hp).astype(jnp.bfloat16)
    b1p = pad2(b1, 1, hp)                        # f32
    w2p = pad2(w2, hp, hp).astype(jnp.bfloat16)
    b2p = pad2(b2, 1, hp)                        # f32
    # Layer 3 has a single output column: keep it as a (1, hp) f32 row so the
    # kernel can do a VPU multiply + lane reduce (no 128-lane padded output).
    w3p = pad2(w3.T, 1, hp)                      # f32, (1, hp)
    b3p = b3                                     # f32, (1, 1)
    return (w1p, b1p, w2p, b2p, w3p, b3p)


def reference_forward(x, params, act_dtype=jnp.float32):
    """Pure-JAX reference mirroring the kernel's casts (bf16 matmul inputs,
    f32 accumulation, bias+tanh in act_dtype, f32 layer 3)."""
    w1, b1, w2, b2, w3, b3 = params
    bf = lambda a: a.astype(jnp.bfloat16)
    h = jnp.dot(bf(x), bf(w1), preferred_element_type=jnp.float32) + b1
    h = jnp.tanh(h.astype(act_dtype)).astype(jnp.bfloat16)
    h = jnp.dot(h, bf(w2), preferred_element_type=jnp.float32) + b2
    h = jnp.tanh(h.astype(act_dtype)).astype(jnp.float32)
    return jnp.dot(h, w3) + b3


if __name__ == "__main__":
    # Shapes consistent with the module: Discriminator(num_inputs=16,
    # hidden_size=32) -> output dim 1.
    num_inputs, hidden_size = 16, 32

    key = jax.random.PRNGKey(0)
    kx, kx2, kp = jax.random.split(key, 3)
    params = init_params(kp, num_inputs, hidden_size, num_outputs=1)
    kernel_params = pack_kernel_params(params)

    act_dtype = _default_act_dtype()
    # bf16 tanh (v6e/v7x path) differs from f32 tanh by ~1 bf16 ulp per hidden
    # unit; the reference mirrors the casts, so a modest tolerance suffices.
    tol = 1e-4 if act_dtype == jnp.float32 else 1e-2

    # 1) Small single-tile batch.
    batch = 8
    x = jax.random.normal(kx, (batch, num_inputs), jnp.float32)
    out = jax.block_until_ready(discriminator_forward(x, kernel_params,
                                                      act_dtype=act_dtype))
    ref = reference_forward(x, params, act_dtype=act_dtype)
    assert out.shape == (batch, 1)
    assert jnp.allclose(out, ref, atol=tol, rtol=tol), "mismatch vs reference (batch=8)"

    # 2) Multi-tile, ragged batch (exercises the 2-step parallel grid and the
    #    masked overhanging last block — no jnp.pad of x).
    batch2 = 300
    x2 = jax.random.normal(kx2, (batch2, num_inputs), jnp.float32)
    out2 = jax.block_until_ready(discriminator_forward(x2, kernel_params,
                                                       act_dtype=act_dtype))
    ref2 = reference_forward(x2, params, act_dtype=act_dtype)
    assert out2.shape == (batch2, 1)
    assert jnp.allclose(out2, ref2, atol=tol, rtol=tol), "mismatch vs reference (batch=300)"

    print("KERNEL_OK")
</pallas_src>

<mosaic_0001>
module attributes {stable_mosaic.version = 11 : i64} {
  func.func @discriminator_kernel(%arg0: i32, %arg1: memref<8x16xf32, #tpu.memory_space<vmem>>, %arg2: memref<16x128xbf16, #tpu.memory_space<vmem>>, %arg3: memref<1x128xf32, #tpu.memory_space<vmem>>, %arg4: memref<128x128xbf16, #tpu.memory_space<vmem>>, %arg5: memref<1x128xf32, #tpu.memory_space<vmem>>, %arg6: memref<1x128xf32, #tpu.memory_space<vmem>>, %arg7: memref<1x1xf32, #tpu.memory_space<vmem>>, %arg8: memref<8x1xf32, #tpu.memory_space<vmem>>) attributes {dimension_semantics = [#tpu.dimension_semantics<parallel>], iteration_bounds = array<i64: 1>, scalar_prefetch = 0 : i64, scratch_operands = 0 : i64, tpu.core_type = #tpu.core_type<tc>, window_params = [{transform_indices = @transform_0, window_bounds = array<i64: 8, 16>}, {pipeline_mode = #tpu.pipeline_mode<synchronous>, transform_indices = @transform_1, window_bounds = array<i64: 16, 128>}, {pipeline_mode = #tpu.pipeline_mode<synchronous>, transform_indices = @transform_2, window_bounds = array<i64: 1, 128>}, {pipeline_mode = #tpu.pipeline_mode<synchronous>, transform_indices = @transform_3, window_bounds = array<i64: 128, 128>}, {pipeline_mode = #tpu.pipeline_mode<synchronous>, transform_indices = @transform_4, window_bounds = array<i64: 1, 128>}, {pipeline_mode = #tpu.pipeline_mode<synchronous>, transform_indices = @transform_5, window_bounds = array<i64: 1, 128>}, {pipeline_mode = #tpu.pipeline_mode<synchronous>, transform_indices = @transform_6, window_bounds = array<i64: 1, 1>}, {transform_indices = @transform_7, window_bounds = array<i64: 8, 1>}]} {
    %c0 = arith.constant 0 : index
    %c0_0 = arith.constant 0 : index
    %0 = vector.load %arg1[%c0, %c0_0] : memref<8x16xf32, #tpu.memory_space<vmem>>, vector<8x16xf32>
    %1 = arith.truncf %0 : vector<8x16xf32> to vector<8x16xbf16>
    %c0_1 = arith.constant 0 : index
    %c0_2 = arith.constant 0 : index
    %2 = vector.load %arg2[%c0_1, %c0_2] : memref<16x128xbf16, #tpu.memory_space<vmem>>, vector<16x128xbf16>
    %cst = arith.constant dense<0.000000e+00> : vector<8x128xf32>
    %3 = tpu.matmul %1, %2, %cst {dimension_numbers = #tpu.dot_dimension_numbers<[1], [0], [0], [1], [0, 0, 1, 1], [], []>} : vector<8x16xbf16>, vector<16x128xbf16>, vector<8x128xf32> -> vector<8x128xf32>
    %c0_3 = arith.constant 0 : index
    %c0_4 = arith.constant 0 : index
    %4 = vector.load %arg3[%c0_3, %c0_4] : memref<1x128xf32, #tpu.memory_space<vmem>>, vector<1x128xf32>
    %5 = vector.broadcast %4 : vector<1x128xf32> to vector<8x128xf32>
    %6 = arith.addf %3, %5 : vector<8x128xf32>
    %7 = math.tanh %6 : vector<8x128xf32>
    %8 = arith.truncf %7 : vector<8x128xf32> to vector<8x128xbf16>
    %c0_5 = arith.constant 0 : index
    %c0_6 = arith.constant 0 : index
    %9 = vector.load %arg4[%c0_5, %c0_6] : memref<128x128xbf16, #tpu.memory_space<vmem>>, vector<128x128xbf16>
    %cst_7 = arith.constant dense<0.000000e+00> : vector<8x128xf32>
    %10 = tpu.matmul %8, %9, %cst_7 {dimension_numbers = #tpu.dot_dimension_numbers<[1], [0], [0], [1], [0, 0, 1, 1], [], []>} : vector<8x128xbf16>, vector<128x128xbf16>, vector<8x128xf32> -> vector<8x128xf32>
    %c0_8 = arith.constant 0 : index
    %c0_9 = arith.constant 0 : index
    %11 = vector.load %arg5[%c0_8, %c0_9] : memref<1x128xf32, #tpu.memory_space<vmem>>, vector<1x128xf32>
    %12 = vector.broadcast %11 : vector<1x128xf32> to vector<8x128xf32>
    %13 = arith.addf %10, %12 : vector<8x128xf32>
    %14 = math.tanh %13 : vector<8x128xf32>
    %c0_10 = arith.constant 0 : index
    %c0_11 = arith.constant 0 : index
    %15 = vector.load %arg6[%c0_10, %c0_11] : memref<1x128xf32, #tpu.memory_space<vmem>>, vector<1x128xf32>
    %16 = vector.broadcast %15 : vector<1x128xf32> to vector<8x128xf32>
    %17 = arith.mulf %14, %16 : vector<8x128xf32>
    %cst_12 = arith.constant dense<0.000000e+00> : vector<8xf32>
    %18 = vector.multi_reduction <add>, %17, %cst_12 [1] : vector<8x128xf32> to vector<8xf32>
    %19 = vector.shape_cast %18 : vector<8xf32> to vector<8x1xf32>
    %c0_13 = arith.constant 0 : index
    %c0_14 = arith.constant 0 : index
    %20 = vector.load %arg7[%c0_13, %c0_14] : memref<1x1xf32, #tpu.memory_space<vmem>>, vector<1x1xf32>
    %21 = vector.broadcast %20 : vector<1x1xf32> to vector<8x1xf32>
    %22 = arith.addf %19, %21 : vector<8x1xf32>
    %c0_15 = arith.constant 0 : index
    %c0_16 = arith.constant 0 : index
    %23 = vector.load %arg8[%c0_15, %c0_16] : memref<8x1xf32, #tpu.memory_space<vmem>>, vector<8x1xf32>
    tpu.vector_store %arg8[%c0_15, %c0_16], %22 {strides = array<i32>} : memref<8x1xf32, #tpu.memory_space<vmem>>, vector<8x1xf32>,
    return
  }
  func.func @transform_0(%arg0: i32) -> (i32, i32) {
    %c0_i32 = arith.constant 0 : i32
    %c0_i32_0 = arith.constant 0 : i32
    return %arg0, %c0_i32 : i32, i32
  }
  func.func @transform_1(%arg0: i32) -> (i32, i32) {
    %c0_i32 = arith.constant 0 : i32
    %c0_i32_0 = arith.constant 0 : i32
    %c0_i32_1 = arith.constant 0 : i32
    return %c0_i32, %c0_i32_0 : i32, i32
  }
  func.func @transform_2(%arg0: i32) -> (i32, i32) {
    %c0_i32 = arith.constant 0 : i32
    %c0_i32_0 = arith.constant 0 : i32
    %c0_i32_1 = arith.constant 0 : i32
    return %c0_i32, %c0_i32_0 : i32, i32
  }
  func.func @transform_3(%arg0: i32) -> (i32, i32) {
    %c0_i32 = arith.constant 0 : i32
    %c0_i32_0 = arith.constant 0 : i32
    %c0_i32_1 = arith.constant 0 : i32
    return %c0_i32, %c0_i32_0 : i32, i32
  }
  func.func @transform_4(%arg0: i32) -> (i32, i32) {
    %c0_i32 = arith.constant 0 : i32
    %c0_i32_0 = arith.constant 0 : i32
    %c0_i32_1 = arith.constant 0 : i32
    return %c0_i32, %c0_i32_0 : i32, i32
  }
  func.func @transform_5(%arg0: i32) -> (i32, i32) {
    %c0_i32 = arith.constant 0 : i32
    %c0_i32_0 = arith.constant 0 : i32
    %c0_i32_1 = arith.constant 0 : i32
    return %c0_i32, %c0_i32_0 : i32, i32
  }
  func.func @transform_6(%arg0: i32) -> (i32, i32) {
    %c0_i32 = arith.constant 0 : i32
    %c0_i32_0 = arith.constant 0 : i32
    %c0_i32_1 = arith.constant 0 : i32
    return %c0_i32, %c0_i32_0 : i32, i32
  }
  func.func @transform_7(%arg0: i32) -> (i32, i32) {
    %c0_i32 = arith.constant 0 : i32
    %c0_i32_0 = arith.constant 0 : i32
    return %arg0, %c0_i32 : i32, i32
  }
}

</mosaic_0001>

<bundles_post_ra>
// kernel: tpu_custom_call.1
= control target key start
LH: loop header
LB: loop body
LE: loop exit
PB: predicated region body
PF: predicated region fallthrough
CT: control target
= control target key end

     0   :  { %s413_s0 = inlined_call_operand.hbm [shape: f32[8,16], index: 0, kind: input, shape index: {}]   ;;  %s414_s1 = inlined_call_operand.hbm [shape: bf16[16,128], index: 1, kind: input, shape index: {}]   ;;  %s415_s2 = inlined_call_operand.vmem [shape: f32[1,128], index: 2, kind: input, shape index: {}]   ;;  %s416_s3 = inlined_call_operand.hbm [shape: bf16[128,128], index: 3, kind: input, shape index: {}]   ;;  %s417_s4 = inlined_call_operand.vmem [shape: f32[1,128], index: 4, kind: input, shape index: {}]   ;;  %s418_s5 = inlined_call_operand.vmem [shape: f32[1,128], index: 5, kind: input, shape index: {}]   ;;  %s419_s6 = inlined_call_operand.<no memory space> [shape: f32[1,1], index: 6, kind: input, shape index: {}]   ;;  %s420_s7 = inlined_call_operand.vmem [shape: f32[8,1], index: 7, kind: output, shape index: {}]  }
   0x1   :  { %v12_v0 = vstv %s419_s6 }
   0x2   :  { %13 = vst [vmem:[#allocation2] sm:$0x1] %v12_v0 }
   0x3   :  { %14 = vsyncpa [#allocation4], 0 }
   0x4   :  { %15 = vsyncpa [#allocation6], 0  ;;  %s31_s28 = sshll.u32 %s414_s1, 4  ;;  %s344_s29 = smov [#allocation5]   ;;  %s32_s28 = int_to_ptr.hbm [resolvable:$true] %s31_s28 }
   0x5   :  { %s33_s30 = sshll.u32 %s344_s29, 4  ;;  %s21_s10 = sshll.u32 %s413_s0, 4  ;;  %s34_s30 = int_to_ptr.vmem [resolvable:$true] %s33_s30  ;;  %s22_s10 = int_to_ptr.hbm [resolvable:$true] %s21_s10 }
   0x6   :  { %s345_s11 = smov 64   ;;  %s346_s12 = smov 4  }
   0x7   :  { %39 = dma.hbm_to_vmem [thread:$0]  %s32_s28, 128, %s34_s30, [#allocation6], %s345_s11, %s345_s11, %s346_s12  }
   0x8   :  { %s347_s6 = smov [#allocation3]   ;;  %s46_s16 = sshll.u32 %s416_s3, 4  ;;  %s47_s16 = int_to_ptr.hbm [resolvable:$true] %s46_s16 }
   0x9   :  { %s23_s13 = sshll.u32 %s347_s6, 4  ;;  %s348_s1 = smov [#allocation7]   ;;  %s24_s13 = int_to_ptr.vmem [resolvable:$true] %s23_s13 }
   0xa   :  { %26 = dma.hbm_to_vmem [thread:$0]  %s22_s10, 128, %s24_s13, [#allocation4]  }
   0xb   :  { %s48_s17 = sshll.u32 %s348_s1, 4  ;;  %s49_s17 = int_to_ptr.vmem [resolvable:$true] %s48_s17 }
   0xc   :  { %54 = dma.hbm_to_vmem [thread:$0]  %s47_s16, 1024, %s49_s17, [#allocation6], %s345_s11, %s345_s11, %s346_s12  }
   0xd   :  { %340 = dma.done.wait [#allocation4], 128  }
   0xe   :  { %341 = vsyncadd [#allocation4], 4294967168 }
   0xf   :  { %342 = dma.done.wait [#allocation6], 1152  }
  0x10   :  { %343 = vsyncadd [#allocation6], 4294966144  ;;  %v246_v1 = vld [vmem:[#allocation5] sm:$0xff]  ;;  %v74_v2 = vld [vmem:[#allocation3] sm:$0xff]  ;;  %vm88_vm0 = vcmask 130048   ;;  %vm201_vm1 = vcmask 7168  }
  0x11   :  { %v254_v3 = vld [vmem:[#allocation7 + $0x38] sm:$0xff]  ;;  %v75_v4 = vpack.c.bf16 %v74_v2, %v74_v2  ;;  %99 = vmatpush.bf16.msra.mxu0 %v246_v1  ;;  %v253_v5 = vld [vmem:[#allocation7 + $0x30] sm:$0xff]  ;;  %v252_v6 = vld [vmem:[#allocation7 + $0x28] sm:$0xff] }
  0x12   :  { %175 = vmatpush.bf16.msra.mxu1 %v254_v3  ;;  %v251_v7 = vld [vmem:[#allocation7 + $0x20] sm:$0xff]  ;;  %v250_v8 = vld [vmem:[#allocation7 + $0x18] sm:$0xff]  ;;  %v249_v9 = vld [vmem:[#allocation7 + $0x10] sm:$0xff] }
  0x13   :  { %v248_v10 = vld [vmem:[#allocation7 + $0x8] sm:$0xff]  ;;  %v247_v11 = vld [vmem:[#allocation7] sm:$0xff] }
  0x14   :  { %213 = vmatmul.msk.bf16.vlgmr.msra.gmra.mxu0 %vm88_vm0, %v75_v4  ;;  %v260_v12 = vld [vmem:[%s415_s2] ss:$0 sm:$0xff] }
  0x15   :  { %v261_v18 = vld [vmem:[%s417_s4] ss:$0 sm:$0xff] }
  0x16   :  { %176 = vmatpush.bf16.msra.mxu1 %v253_v5  ;;  %v262_v21 = vld [vmem:[%s418_s5] ss:$0 sm:$0xff] }
  0x17   :  { %v263_v25 = vld [vmem:[#allocation2] ss:$0 sm:$0xff] }
  0x1a   :  { %177 = vmatpush.bf16.msra.mxu1 %v252_v6 }
  0x1e   :  { %178 = vmatpush.bf16.msra.mxu1 %v251_v7 }
  0x22   :  { %179 = vmatpush.bf16.msra.mxu1 %v250_v8 }
  0x26   :  { %180 = vmatpush.bf16.msra.mxu1 %v249_v9 }
  0x2a   :  { %181 = vmatpush.bf16.msra.mxu1 %v248_v10 }
  0x2e   :  { %182 = vmatpush.bf16.msra.mxu1 %v247_v11 }
  0x91   :  { %v101_v13 = vpop.f32.mrf.mxu0 }
  0x92   :  { %v102_v14 = vadd.f32 %v260_v12, %v101_v13 }
  0x94   :  { %264 = vtanh.f32 %v102_v14 }
  0x99   :  { %v103_v15 = vpop.f32.mrf.mxu0 }
  0x9a   :  { %v265_v16 = vpop.eup %264 }
  0x9b   :  { %v106_v17 = vpack.c.bf16 %v265_v16, %v265_v16 }
  0x9d   :  { %183 = vmatmul.bf16.vlgmr.msra.gmra.mxu1 %v106_v17 }
 0x11a   :  { %v184_v19 = vpop.f32.mrf.mxu1 }
 0x11b   :  { %v185_v20 = vadd.f32 %v261_v18, %v184_v19 }
 0x11d   :  { %266 = vtanh.f32 %v185_v20 }
 0x122   :  { %v186_v22 = vpop.f32.mrf.mxu1 }
 0x123   :  { %v267_v23 = vpop.eup %266 }
 0x124   :  { %v193_v24 = vmul.f32 %v267_v23, %v262_v21 }
 0x126   :  { %194 = vadd.xlane.f32.xlu0 %v193_v24 }
 0x199   :  { %v195_v26 = vpop.xlane.xlu0 %194 }
 0x19a   :  { %v200_v27 = vadd.f32 %v263_v25, %v195_v26 }
 0x19c   :  { %202 = vst.msk [vmem:[%s420_s7] sm:$0xff] %vm201_vm1, %v200_v27 }
 0x19d   :  { %207 = vsyncpa [#allocation4], 1 }
 0x19e   :  { %208 = vsyncpa [#allocation6], 1 }

</bundles_post_ra>
